<compile_context>
chip_gen: v7x
topology: tpu7x:2x2x1
jax: 0.10.0
libtpu: 0.0.40
codegen_flags: <defaults>
</compile_context>

<pallas_src>
import functools
import math

import numpy as np
import jax
import jax.numpy as jnp
from jax.experimental import pallas as pl
from jax.experimental.pallas import tpu as pltpu


def _best_tile(n, cap, multiple=128):
    """Largest divisor of n that is <= cap and a multiple of `multiple`."""
    cap = min(cap, n)
    for t in range(cap, 0, -1):
        if n % t == 0 and t % multiple == 0:
            return t
    return n  # fall back to the full extent (always a legal block)


def _default_vmem_limit():
    """Per-generation scoped-VMEM limit (bytes); None = compiler default."""
    try:
        kind = jax.devices()[0].device_kind.lower()
    except Exception:
        return None
    if "v7" in kind:
        return 48 * 1024 * 1024          # 64 MiB physical per TensorCore
    if "v6" in kind or "v5" in kind or "v4" in kind:
        return 96 * 1024 * 1024          # 128 MiB physical
    return None                          # unknown / older chips


def _qkv_flash_kernel(q_ref, k_ref, v_ref, o_ref, m_sc, l_sc, acc_sc, qs_sc, *,
                      scale2, mxu_dtype, tk, t_valid, needs_mask):
    # q_ref: (Hb, C, tq)   k_ref / v_ref: (Hb, C, tk)   o_ref: (Hb, C, tq)
    ki = pl.program_id(2)

    @pl.when(ki == 0)
    def _init():
        m_sc[...] = jnp.full_like(m_sc, -jnp.inf)
        l_sc[...] = jnp.zeros_like(l_sc)
        acc_sc[...] = jnp.zeros_like(acc_sc)
        # Hoisted out of the key loop: q only changes with (head-block, q-tile).
        # scale2 = 1/sqrt(C) folds both reference scale factors into q.
        qs_sc[...] = (q_ref[...].astype(jnp.float32) * scale2).astype(mxu_dtype)

    q = qs_sc[...]
    k = k_ref[...].astype(mxu_dtype)        # no-op if wrapper already cast

    # s[h, u, t] = sum_c k[h, c, u] * q[h, c, t]   ->  (Hb, tk, tq)
    s = jax.lax.dot_general(
        k, q,
        dimension_numbers=(((1,), (1,)), ((0,), (0,))),
        preferred_element_type=jnp.float32,
    )

    if needs_mask:
        key_pos = ki * tk + jax.lax.broadcasted_iota(jnp.int32, s.shape, 1)
        s = jnp.where(key_pos < t_valid, s, -jnp.inf)

    # Online softmax over the key axis (axis 1); softmax math stays in f32.
    m_prev = m_sc[...]                                         # (Hb, 1, tq)
    m_new = jnp.maximum(m_prev, jnp.max(s, axis=1, keepdims=True))
    alpha = jnp.exp(m_prev - m_new)                            # (Hb, 1, tq)
    p = jnp.exp(s - m_new)                                     # (Hb, tk, tq)
    p_mxu = p.astype(mxu_dtype)

    # Softmax row-sum on the MXU (with K=C it has plenty of slack; the VALU is
    # the saturating slot for these small head dims).
    ones_row = jnp.ones((p.shape[0], 1, p.shape[1]), mxu_dtype)
    l_step = jax.lax.dot_general(
        ones_row, p_mxu,
        dimension_numbers=(((2,), (1,)), ((0,), (0,))),
        preferred_element_type=jnp.float32,
    )                                                          # (Hb, 1, tq)
    l_sc[...] = alpha * l_sc[...] + l_step

    # pv[h, c, t] = sum_u v[h, c, u] * p[h, u, t]  ->  (Hb, C, tq)
    v = v_ref[...].astype(mxu_dtype)
    pv = jax.lax.dot_general(
        v, p_mxu,
        dimension_numbers=(((2,), (1,)), ((0,), (0,))),
        preferred_element_type=jnp.float32,
    )

    acc_sc[...] = alpha * acc_sc[...] + pv
    m_sc[...] = m_new

    @pl.when(ki == pl.num_programs(2) - 1)
    def _finalize():
        inv_l = pl.reciprocal(l_sc[...], approx=True)          # EUP slot, ~free
        o_ref[...] = (acc_sc[...] * inv_l).astype(o_ref.dtype)


def qkv_attention_legacy(qkv, n_heads, *, mxu_dtype=jnp.bfloat16,
                         tq=None, tk=None, head_block=None,
                         vmem_limit_bytes=None):
    """qkv: [N, H*3*C, T] -> [N, H*C, T] (matches QKVAttentionLegacy.forward)."""
    bs, width, length = qkv.shape
    assert width % (3 * n_heads) == 0
    ch = width // (3 * n_heads)
    B = bs * n_heads
    T = length
    out_dtype = qkv.dtype
    scale2 = 1.0 / math.sqrt(ch)          # == scale * scale from the reference

    # Pad T to a multiple of 128 so all tiles are lane-dense.
    T_pad = max(128, ((T + 127) // 128) * 128)
    needs_mask = (T_pad != T)

    qkv_r = qkv.reshape(B, 3, ch, T)      # metadata-only reshape
    if needs_mask:
        qkv_r = jnp.pad(qkv_r, ((0, 0), (0, 0), (0, 0), (0, T_pad - T)))

    if vmem_limit_bytes is None:
        vmem_limit_bytes = _default_vmem_limit()
    block_budget = (vmem_limit_bytes or (32 * 1024 * 1024)) // 2  # headroom for
    # scratch + compiler-internal spill of the score block.

    is_bf16_mxu = np.dtype(mxu_dtype) == np.dtype(jnp.bfloat16)
    in_bytes = qkv_r.dtype.itemsize

    # Query tile: K/V HBM re-streaming (if any) scales as T/tq, so go large.
    if tq is None:
        tq = _best_tile(T_pad, 512)

    # Key tile: full T when the double-buffered K/V blocks fit the VMEM budget;
    # then the k/v index_map depends only on the head block and Pallas fetches
    # K/V from HBM exactly once per head block.  Cast to bf16 in the wrapper
    # only when that is what makes full-T residency affordable, or when K/V
    # would otherwise be re-streamed per query tile (halves those HBM bytes).
    cast_to_bf16 = False
    if tk is None:
        def kv_block_bytes(tk_, bytes_):
            return 2 * 2 * 2 * ch * tk_ * bytes_   # k+v, double-buffered, Hb<=2
        if kv_block_bytes(T_pad, in_bytes) <= block_budget:
            tk = T_pad
        elif is_bf16_mxu and in_bytes > 2 and kv_block_bytes(T_pad, 2) <= block_budget:
            tk = T_pad
            cast_to_bf16 = True
        else:
            tk = _best_tile(T_pad, 512)
            cast_to_bf16 = is_bf16_mxu and in_bytes > 2 and (T_pad // tq) >= 2
    if cast_to_bf16:
        qkv_r = qkv_r.astype(jnp.bfloat16)

    assert T_pad % tq == 0 and T_pad % tk == 0
    assert (tq % 128 == 0 or tq == T_pad) and (tk % 128 == 0 or tk == T_pad)

    # Heads per grid step: the live (Hb, tk, tq) f32 score block lives in
    # vregs / compiler spill, so keep it <= ~512 KiB; keep the parallel grid
    # extent >= 4 so a v7x megacore has work for both TensorCores.
    if head_block is None:
        hb_cap = max(1, (512 * 1024) // (tq * tk * 4))
        head_block = _best_tile(B, min(2, hb_cap), multiple=1)
        if head_block > 1 and (B // head_block) * (T_pad // tq) < 4:
            head_block = 1
    Hb = head_block
    assert B % Hb == 0

    grid = (B // Hb, T_pad // tq, T_pad // tk)

    q_spec = pl.BlockSpec((Hb, pl.Squeezed(), ch, tq),
                          lambda b, qi, ki: (b, 0, 0, qi))
    k_spec = pl.BlockSpec((Hb, pl.Squeezed(), ch, tk),
                          lambda b, qi, ki: (b, 1, 0, ki))
    v_spec = pl.BlockSpec((Hb, pl.Squeezed(), ch, tk),
                          lambda b, qi, ki: (b, 2, 0, ki))
    o_spec = pl.BlockSpec((Hb, ch, tq), lambda b, qi, ki: (b, 0, qi))

    kernel = functools.partial(
        _qkv_flash_kernel, scale2=scale2, mxu_dtype=mxu_dtype,
        tk=tk, t_valid=T, needs_mask=needs_mask)

    out = pl.pallas_call(
        kernel,
        out_shape=jax.ShapeDtypeStruct((B, ch, T_pad), out_dtype),
        grid_spec=pltpu.PrefetchScalarGridSpec(
            num_scalar_prefetch=0,
            grid=grid,
            in_specs=[q_spec, k_spec, v_spec],
            out_specs=o_spec,
            scratch_shapes=[
                pltpu.VMEM((Hb, 1, tq), jnp.float32),    # running max
                pltpu.VMEM((Hb, 1, tq), jnp.float32),    # running sum
                pltpu.VMEM((Hb, ch, tq), jnp.float32),   # output accumulator
                pltpu.VMEM((Hb, ch, tq), mxu_dtype),     # scaled q (reused over ki)
            ],
        ),
        compiler_params=pltpu.CompilerParams(
            dimension_semantics=("parallel", "parallel", "arbitrary"),
            vmem_limit_bytes=vmem_limit_bytes,
        ),
    )(qkv_r, qkv_r, qkv_r)

    if needs_mask:
        out = out[:, :, :T]
    return out.reshape(bs, n_heads * ch, T)


def _reference(qkv, n_heads):
    bs, width, length = qkv.shape
    ch = width // (3 * n_heads)
    x = qkv.reshape(bs * n_heads, 3 * ch, length)
    q, k, v = x[:, :ch], x[:, ch:2 * ch], x[:, 2 * ch:]
    scale = 1.0 / math.sqrt(math.sqrt(ch))
    w = jnp.einsum('bct,bcs->bts', q * scale, k * scale)
    w = jax.nn.softmax(w.astype(jnp.float32), axis=-1)
    a = jnp.einsum('bts,bcs->bct', w, v)
    return a.reshape(bs, -1, length)


if __name__ == "__main__":
    # Small shapes consistent with the module: N=2, heads=4, C=8, T=256
    # (T = flattened 16x16 spatial map).
    N, H, C, T = 2, 4, 8, 256
    key = jax.random.PRNGKey(0)
    qkv = jax.random.normal(key, (N, H * 3 * C, T), dtype=jnp.float32)
    ref = _reference(qkv, n_heads=H)

    # 1) f32-MXU path, forced multi-tile grid: exercises the online-softmax
    #    accumulation across key tiles and multiple head blocks.
    out_f32 = qkv_attention_legacy(qkv, n_heads=H, mxu_dtype=jnp.float32,
                                   tq=128, tk=128, head_block=2)
    out_f32 = jax.block_until_ready(out_f32)
    assert out_f32.shape == (N, H * C, T)
    assert jnp.allclose(out_f32, ref, atol=1e-2, rtol=1e-2), "f32 path mismatch"

    # 2) Default perf config: bf16 MXU operands with f32 accumulation, full-T
    #    key blocks (K/V fetched from HBM once per head block).
    out_bf16 = qkv_attention_legacy(qkv, n_heads=H)
    out_bf16 = jax.block_until_ready(out_bf16)
    assert out_bf16.shape == (N, H * C, T)
    assert jnp.allclose(out_bf16, ref, atol=5e-2, rtol=5e-2), "bf16 path mismatch"

    # 3) Non-multiple-of-128 T: exercises the pad + key-mask path.
    T2 = 200
    qkv2 = jax.random.normal(jax.random.PRNGKey(0), (N, H * 3 * C, T2),
                             dtype=jnp.float32)
    ref2 = _reference(qkv2, n_heads=H)
    out2 = qkv_attention_legacy(qkv2, n_heads=H)
    out2 = jax.block_until_ready(out2)
    assert out2.shape == (N, H * C, T2)
    assert jnp.allclose(out2, ref2, atol=5e-2, rtol=5e-2), "masked path mismatch"

    print("KERNEL_OK")
</pallas_src>

<mosaic_0001>
module attributes {stable_mosaic.version = 11 : i64} {
  func.func @_qkv_flash_kernel(%arg0: i32, %arg1: i32, %arg2: i32, %arg3: memref<2x1x8x128xf32, #tpu.memory_space<vmem>>, %arg4: memref<2x1x8x128xf32, #tpu.memory_space<vmem>>, %arg5: memref<2x1x8x128xf32, #tpu.memory_space<vmem>>, %arg6: memref<2x8x128xf32, #tpu.memory_space<vmem>>, %arg7: memref<2x1x128xf32, #tpu.memory_space<vmem>>, %arg8: memref<2x1x128xf32, #tpu.memory_space<vmem>>, %arg9: memref<2x8x128xf32, #tpu.memory_space<vmem>>, %arg10: memref<2x8x128xf32, #tpu.memory_space<vmem>>) attributes {dimension_semantics = [#tpu.dimension_semantics<parallel>, #tpu.dimension_semantics<parallel>, #tpu.dimension_semantics<arbitrary>], iteration_bounds = array<i64: 4, 2, 2>, scalar_prefetch = 0 : i64, scratch_operands = 4 : i64, tpu.core_type = #tpu.core_type<tc>, window_params = [{transform_indices = @transform_0, window_bounds = array<i64: 2, 1, 8, 128>}, {transform_indices = @transform_1, window_bounds = array<i64: 2, 1, 8, 128>}, {transform_indices = @transform_2, window_bounds = array<i64: 2, 1, 8, 128>}, {transform_indices = @transform_3, window_bounds = array<i64: 2, 8, 128>}]} {
    %c0_i32 = arith.constant 0 : i32
    %0 = arith.cmpi eq, %arg2, %c0_i32 : i32
    %1 = arith.extui %0 : i1 to i32
    %c0_i32_0 = arith.constant 0 : i32
    %2 = arith.cmpi ne, %1, %c0_i32_0 : i32
    scf.if %2 {
      %cst_34 = arith.constant 0xFF800000 : f32
      %34 = vector.broadcast %cst_34 : f32 to vector<2x1x128xf32>
      %c0_35 = arith.constant 0 : index
      %c0_36 = arith.constant 0 : index
      %c0_37 = arith.constant 0 : index
      %35 = vector.load %arg7[%c0_35, %c0_36, %c0_37] : memref<2x1x128xf32, #tpu.memory_space<vmem>>, vector<2x1x128xf32>
      tpu.vector_store %arg7[%c0_35, %c0_36, %c0_37], %34 {strides = array<i32>} : memref<2x1x128xf32, #tpu.memory_space<vmem>>, vector<2x1x128xf32>,
      %cst_38 = arith.constant 0.000000e+00 : f32
      %36 = vector.broadcast %cst_38 : f32 to vector<2x1x128xf32>
      %c0_39 = arith.constant 0 : index
      %c0_40 = arith.constant 0 : index
      %c0_41 = arith.constant 0 : index
      %37 = vector.load %arg8[%c0_39, %c0_40, %c0_41] : memref<2x1x128xf32, #tpu.memory_space<vmem>>, vector<2x1x128xf32>
      tpu.vector_store %arg8[%c0_39, %c0_40, %c0_41], %36 {strides = array<i32>} : memref<2x1x128xf32, #tpu.memory_space<vmem>>, vector<2x1x128xf32>,
      %cst_42 = arith.constant 0.000000e+00 : f32
      %38 = vector.broadcast %cst_42 : f32 to vector<2x8x128xf32>
      %c0_43 = arith.constant 0 : index
      %c0_44 = arith.constant 0 : index
      %c0_45 = arith.constant 0 : index
      %39 = vector.load %arg9[%c0_43, %c0_44, %c0_45] : memref<2x8x128xf32, #tpu.memory_space<vmem>>, vector<2x8x128xf32>
      tpu.vector_store %arg9[%c0_43, %c0_44, %c0_45], %38 {strides = array<i32>} : memref<2x8x128xf32, #tpu.memory_space<vmem>>, vector<2x8x128xf32>,
      %c0_46 = arith.constant 0 : index
      %c0_47 = arith.constant 0 : index
      %c0_48 = arith.constant 0 : index
      %c0_49 = arith.constant 0 : index
      %40 = vector.load %arg3[%c0_46, %c0_47, %c0_48, %c0_49] : memref<2x1x8x128xf32, #tpu.memory_space<vmem>>, vector<2x1x8x128xf32>
      %41 = vector.shape_cast %40 : vector<2x1x8x128xf32> to vector<2x8x128xf32>
      %cst_50 = arith.constant 0.353553385 : f32
      %42 = vector.broadcast %cst_50 : f32 to vector<2x8x128xf32>
      %43 = arith.mulf %41, %42 : vector<2x8x128xf32>
      %c0_51 = arith.constant 0 : index
      %c0_52 = arith.constant 0 : index
      %c0_53 = arith.constant 0 : index
      %44 = vector.load %arg10[%c0_51, %c0_52, %c0_53] : memref<2x8x128xf32, #tpu.memory_space<vmem>>, vector<2x8x128xf32>
      tpu.vector_store %arg10[%c0_51, %c0_52, %c0_53], %43 {strides = array<i32>} : memref<2x8x128xf32, #tpu.memory_space<vmem>>, vector<2x8x128xf32>,
    } else {
    }
    %c0 = arith.constant 0 : index
    %c0_1 = arith.constant 0 : index
    %c0_2 = arith.constant 0 : index
    %3 = vector.load %arg10[%c0, %c0_1, %c0_2] : memref<2x8x128xf32, #tpu.memory_space<vmem>>, vector<2x8x128xf32>
    %c0_3 = arith.constant 0 : index
    %c0_4 = arith.constant 0 : index
    %c0_5 = arith.constant 0 : index
    %c0_6 = arith.constant 0 : index
    %4 = vector.load %arg4[%c0_3, %c0_4, %c0_5, %c0_6] : memref<2x1x8x128xf32, #tpu.memory_space<vmem>>, vector<2x1x8x128xf32>
    %5 = vector.shape_cast %4 : vector<2x1x8x128xf32> to vector<2x8x128xf32>
    %cst = arith.constant dense<0.000000e+00> : vector<2x128x128xf32>
    %6 = tpu.matmul %5, %3, %cst {dimension_numbers = #tpu.dot_dimension_numbers<[1], [1], [2], [2], [0, 0, 0, 2, 1, 2], [0], [0]>} : vector<2x8x128xf32>, vector<2x8x128xf32>, vector<2x128x128xf32> -> vector<2x128x128xf32>
    %c0_7 = arith.constant 0 : index
    %c0_8 = arith.constant 0 : index
    %c0_9 = arith.constant 0 : index
    %7 = vector.load %arg7[%c0_7, %c0_8, %c0_9] : memref<2x1x128xf32, #tpu.memory_space<vmem>>, vector<2x1x128xf32>
    %cst_10 = arith.constant dense<0xFF800000> : vector<2x128xf32>
    %8 = vector.multi_reduction <maximumf>, %6, %cst_10 [1] : vector<2x128x128xf32> to vector<2x128xf32>
    %9 = vector.shape_cast %8 : vector<2x128xf32> to vector<2x1x128xf32>
    %10 = arith.maximumf %7, %9 : vector<2x1x128xf32>
    %11 = arith.subf %7, %10 : vector<2x1x128xf32>
    %12 = math.exp %11 : vector<2x1x128xf32>
    %13 = vector.broadcast %10 : vector<2x1x128xf32> to vector<2x128x128xf32>
    %14 = arith.subf %6, %13 : vector<2x128x128xf32>
    %15 = math.exp %14 : vector<2x128x128xf32>
    %cst_11 = arith.constant 1.000000e+00 : f32
    %16 = vector.broadcast %cst_11 : f32 to vector<2x1x128xf32>
    %cst_12 = arith.constant dense<0.000000e+00> : vector<2x1x128xf32>
    %17 = tpu.matmul %16, %15, %cst_12 {dimension_numbers = #tpu.dot_dimension_numbers<[2], [1], [1], [2], [0, 0, 0, 1, 1, 2], [0], [0]>} : vector<2x1x128xf32>, vector<2x128x128xf32>, vector<2x1x128xf32> -> vector<2x1x128xf32>
    %c0_13 = arith.constant 0 : index
    %c0_14 = arith.constant 0 : index
    %c0_15 = arith.constant 0 : index
    %18 = vector.load %arg8[%c0_13, %c0_14, %c0_15] : memref<2x1x128xf32, #tpu.memory_space<vmem>>, vector<2x1x128xf32>
    %19 = arith.mulf %12, %18 : vector<2x1x128xf32>
    %20 = arith.addf %19, %17 : vector<2x1x128xf32>
    %c0_16 = arith.constant 0 : index
    %c0_17 = arith.constant 0 : index
    %c0_18 = arith.constant 0 : index
    %21 = vector.load %arg8[%c0_16, %c0_17, %c0_18] : memref<2x1x128xf32, #tpu.memory_space<vmem>>, vector<2x1x128xf32>
    tpu.vector_store %arg8[%c0_16, %c0_17, %c0_18], %20 {strides = array<i32>} : memref<2x1x128xf32, #tpu.memory_space<vmem>>, vector<2x1x128xf32>,
    %c0_19 = arith.constant 0 : index
    %c0_20 = arith.constant 0 : index
    %c0_21 = arith.constant 0 : index
    %c0_22 = arith.constant 0 : index
    %22 = vector.load %arg5[%c0_19, %c0_20, %c0_21, %c0_22] : memref<2x1x8x128xf32, #tpu.memory_space<vmem>>, vector<2x1x8x128xf32>
    %23 = vector.shape_cast %22 : vector<2x1x8x128xf32> to vector<2x8x128xf32>
    %cst_23 = arith.constant dense<0.000000e+00> : vector<2x8x128xf32>
    %24 = tpu.matmul %23, %15, %cst_23 {dimension_numbers = #tpu.dot_dimension_numbers<[2], [1], [1], [2], [0, 0, 0, 1, 1, 2], [0], [0]>} : vector<2x8x128xf32>, vector<2x128x128xf32>, vector<2x8x128xf32> -> vector<2x8x128xf32>
    %c0_24 = arith.constant 0 : index
    %c0_25 = arith.constant 0 : index
    %c0_26 = arith.constant 0 : index
    %25 = vector.load %arg9[%c0_24, %c0_25, %c0_26] : memref<2x8x128xf32, #tpu.memory_space<vmem>>, vector<2x8x128xf32>
    %26 = vector.broadcast %12 : vector<2x1x128xf32> to vector<2x8x128xf32>
    %27 = arith.mulf %26, %25 : vector<2x8x128xf32>
    %28 = arith.addf %27, %24 : vector<2x8x128xf32>
    %c0_27 = arith.constant 0 : index
    %c0_28 = arith.constant 0 : index
    %c0_29 = arith.constant 0 : index
    %29 = vector.load %arg9[%c0_27, %c0_28, %c0_29] : memref<2x8x128xf32, #tpu.memory_space<vmem>>, vector<2x8x128xf32>
    tpu.vector_store %arg9[%c0_27, %c0_28, %c0_29], %28 {strides = array<i32>} : memref<2x8x128xf32, #tpu.memory_space<vmem>>, vector<2x8x128xf32>,
    %c0_30 = arith.constant 0 : index
    %c0_31 = arith.constant 0 : index
    %c0_32 = arith.constant 0 : index
    %30 = vector.load %arg7[%c0_30, %c0_31, %c0_32] : memref<2x1x128xf32, #tpu.memory_space<vmem>>, vector<2x1x128xf32>
    tpu.vector_store %arg7[%c0_30, %c0_31, %c0_32], %10 {strides = array<i32>} : memref<2x1x128xf32, #tpu.memory_space<vmem>>, vector<2x1x128xf32>,
    %c1_i32 = arith.constant 1 : i32
    %31 = arith.cmpi eq, %arg2, %c1_i32 : i32
    %32 = arith.extui %31 : i1 to i32
    %c0_i32_33 = arith.constant 0 : i32
    %33 = arith.cmpi ne, %32, %c0_i32_33 : i32
    scf.if %33 {
      %c0_34 = arith.constant 0 : index
      %c0_35 = arith.constant 0 : index
      %c0_36 = arith.constant 0 : index
      %34 = vector.load %arg8[%c0_34, %c0_35, %c0_36] : memref<2x1x128xf32, #tpu.memory_space<vmem>>, vector<2x1x128xf32>
      %35 = tpu.reciprocal %34 {approx = true} : vector<2x1x128xf32> -> vector<2x1x128xf32>
      %c0_37 = arith.constant 0 : index
      %c0_38 = arith.constant 0 : index
      %c0_39 = arith.constant 0 : index
      %36 = vector.load %arg9[%c0_37, %c0_38, %c0_39] : memref<2x8x128xf32, #tpu.memory_space<vmem>>, vector<2x8x128xf32>
      %37 = vector.broadcast %35 : vector<2x1x128xf32> to vector<2x8x128xf32>
      %38 = arith.mulf %36, %37 : vector<2x8x128xf32>
      %c0_40 = arith.constant 0 : index
      %c0_41 = arith.constant 0 : index
      %c0_42 = arith.constant 0 : index
      %39 = vector.load %arg6[%c0_40, %c0_41, %c0_42] : memref<2x8x128xf32, #tpu.memory_space<vmem>>, vector<2x8x128xf32>
      tpu.vector_store %arg6[%c0_40, %c0_41, %c0_42], %38 {strides = array<i32>} : memref<2x8x128xf32, #tpu.memory_space<vmem>>, vector<2x8x128xf32>,
    } else {
    }
    return
  }
  func.func @transform_0(%arg0: i32, %arg1: i32, %arg2: i32) -> (i32, i32, i32, i32) {
    %c0_i32 = arith.constant 0 : i32
    %c0_i32_0 = arith.constant 0 : i32
    %c0_i32_1 = arith.constant 0 : i32
    return %arg0, %c0_i32, %c0_i32_0, %arg1 : i32, i32, i32, i32
  }
  func.func @transform_1(%arg0: i32, %arg1: i32, %arg2: i32) -> (i32, i32, i32, i32) {
    %c1_i32 = arith.constant 1 : i32
    %c0_i32 = arith.constant 0 : i32
    %c0_i32_0 = arith.constant 0 : i32
    return %arg0, %c1_i32, %c0_i32, %arg2 : i32, i32, i32, i32
  }
  func.func @transform_2(%arg0: i32, %arg1: i32, %arg2: i32) -> (i32, i32, i32, i32) {
    %c2_i32 = arith.constant 2 : i32
    %c0_i32 = arith.constant 0 : i32
    %c0_i32_0 = arith.constant 0 : i32
    return %arg0, %c2_i32, %c0_i32, %arg2 : i32, i32, i32, i32
  }
  func.func @transform_3(%arg0: i32, %arg1: i32, %arg2: i32) -> (i32, i32, i32) {
    %c0_i32 = arith.constant 0 : i32
    %c0_i32_0 = arith.constant 0 : i32
    return %arg0, %c0_i32, %arg1 : i32, i32, i32
  }
}

</mosaic_0001>

<bundles_post_ra>
// kernel: tpu_custom_call.1
= control target key start
LH: loop header
LB: loop body
LE: loop exit
PB: predicated region body
PF: predicated region fallthrough
CT: control target
= control target key end

     0   :  { %s3030_s0 = inlined_call_operand.hbm [shape: f32[8,3,8,256], index: 0, kind: input, shape index: {}]   ;;  %s3031_s1 = inlined_call_operand.hbm [shape: f32[8,3,8,256], index: 1, kind: input, shape index: {}]   ;;  %s3032_s2 = inlined_call_operand.hbm [shape: f32[8,3,8,256], index: 2, kind: input, shape index: {}]   ;;  %s3033_s3 = inlined_call_operand.hbm [shape: f32[8,8,256], index: 3, kind: output, shape index: {}]  }
   0x1   :  { %3064 = sst [smem:[#allocation31_spill]] %s3031_s1 }
   0x2   :  { %3065 = sst [smem:[#allocation32_spill]] %s3033_s3 }
   0x3   :  { %8 = vsyncpa [#allocation7], 0 }
   0x4   :  { %10 = vsyncpa [#allocation7 + $0x1], 0 }
   0x5   :  { %11 = vsyncpa [#allocation10], 0 }
   0x6   :  { %13 = vsyncpa [#allocation10 + $0x1], 0 }
   0x7   :  { %14 = vsyncpa [#allocation8], 0 }
   0x8   :  { %16 = vsyncpa [#allocation8 + $0x1], 0  ;;  %s2366_s12 = smov 0   ;;  %s2368_s13 = smov 0  }
   0x9   :  { %s2370_s14 = smov 0   ;;  %s2372_s15 = smov 0  }
   0xa   :  { %s2374_s16 = smov 0   ;;  %s2376_s17 = smov 0  }
   0xb   :  { %s2378_s18 = smov 0   ;;  %s2380_s19 = smov 0  }
   0xc   :  { %s2382_s20 = smov 0   ;;  %s2384_s21 = smov 0  }
   0xd   :  { %s2386_s22 = smov 0   ;;  %s2388_s23 = smov 0  }
   0xe   :  { %s2390_s24 = smov 0  }
   0xf LB: > { %3066 = sst [smem:[#allocation16_spill]] %s2284_s13  ;;  %s2430_s25 = sadd.s32 4294967295, %s2328_s24   ;;  %s2328_s24 = sphi %s2390_s24, %s22_s24   ;;  %s2324_s23 = sphi %s2388_s23, %s3128_s23   ;;  %s2320_s22 = sphi %s2386_s22, %s3135_s22   ;;  %s2316_s21 = sphi %s2384_s21, %s3134_s21   ;;  %s2312_s20 = sphi %s2382_s20, %s3126_s20   ;;  %s2308_s19 = sphi %s2380_s19, %s3125_s19   ;;  %s2304_s18 = sphi %s2378_s18, %s3133_s18   ;;  %s2300_s17 = sphi %s2376_s17, %s3132_s17   ;;  %s2296_s16 = sphi %s2374_s16, %s3131_s16   ;;  %s2292_s15 = sphi %s2372_s15, %s3124_s15   ;;  %s2288_s14 = sphi %s2370_s14, %s3130_s14   ;;  %s2284_s13 = sphi %s2368_s13, %s3129_s13   ;;  %s2280_s12 = sphi %s2366_s12, %s3123_s12  }
  0x10   : > { %3067 = sst [smem:[#allocation17_spill]] %s2292_s15  ;;  %s34_s26 = sadd.s32 1, %s2316_s21 }
  0x11   : > { %3068 = sst [smem:[#allocation18_spill]] %s2296_s16  ;;  %p2433_p0 = scmp.ge.s32.totalorder %s34_s26, 2 }
  0x12   : > { %3069 = sst [smem:[#allocation19_spill]] %s2304_s18  ;;  %p3038_p1 = scmp.eq.s32.totalorder %s2328_s24, 0 }
  0x13   : > { %3070 = sst [smem:[#allocation20_spill]] %s2308_s19  ;;  %p3037_p2 = scmp.eq.s32.totalorder %s2430_s25, 0 }
  0x14   : > { %3071 = sst [smem:[#allocation21_spill]] %s2312_s20  ;;  %s3137_s26 = smov (%p2433_p0, %s34_s26), 0 }
  0x15   : > { %3072 = sst [smem:[#allocation22_spill]] %s2320_s22  ;;  %p85_p3 = scmp.ne.s32.totalorder %s2288_s14, %s2284_s13 }
  0x16   : > { %3073 = sst [smem:[#allocation23_spill]] %s2324_s23  ;;  %p91_p4 = scmp.ne.s32.totalorder %s2284_s13, %s2280_s12 }
  0x17   : > { %3074 = sst [smem:[#allocation24_spill]] %s2430_s25  ;;  %p2452_p5 = por %p85_p3, %p3038_p1 }
  0x18   : > { %p2458_p6 = por %p91_p4, %p3037_p2  ;;  %p3036_p7 = scmp.lt.s32.totalorder %s2328_s24, 16 }
  0x19   : > { %s3035_s6 = smul.u32 12, %s2324_s23  ;;  %s194_s7 = sand.u32 1, %s2328_s24  }
  0x1a   : > { %s3077_s5 = scalar_select %p2458_p6, 1, 0 }
  0x1b   : > { %s196_s8 = sand.u32 1, %s2288_s14   ;;  %s1331_s10 = sadd.s32 %s2316_s21, %s3035_s6 }
  0x1c   : > { %3078 = sst [smem:[#allocation25_spill]] %s3077_s5  ;;  %s2466_s9 = sshll.u32 %s196_s8, 4 }
  0x1d   : > { %s1442_s11 = sshll.u32 %s1331_s10, 7  ;;  %s198_s12 = scalar_lea.vmem [#allocation9], %s2466_s9 }
  0x1e   : > { %s208_s29 = sshll.u32 %s198_s12, 4  ;;  %s3079_s1 = sld [smem:[#allocation31_spill]]  ;;  %s2475_s29 = int_to_ptr.vmem [resolvable:$true] %s208_s29 }
  0x1f   : > { %p2483_p8 = pnand %p3036_p7, %p2452_p5  ;;  %s2490_s28 = scalar_lea.hbm %s3032_s2, %s1442_s11 }
  0x20   : > { %s2493_s30 = scalar_lea.hbm %s2490_s28, 512  ;;  %s2495_s12 = scalar_lea.sflag [#allocation10], %s194_s7 }
  0x21   : > { %p2096_p10 = pneg %p2483_p8 }
  0x24   : > { %s1333_s3 = scalar_lea.hbm %s3079_s1, %s1442_s11  ;;  %s2099_s6 = scalar_lea.hbm %s3079_s1, 6144 }
  0x25   : > { %s2477_s19 = scalar_lea.hbm %s1333_s3, 256  ;;  %s2124_s4 = scalar_lea.hbm %s1333_s3, 512 }
  0x26   : > { %p2095_p9 = scmp.ne.s32.totalorder %s2477_s19, %s2124_s4  ;;  %p2100_p13 = scmp.lt.u32.totalorder %s2477_s19, %s3079_s1 }
  0x27   : > { %p2101_p3 = scmp.lt.u32.totalorder %s2099_s6, %s2124_s4  ;;  %p2103_p5 = scmp.lt.u32.totalorder %s2124_s4, %s2477_s19 }
  0x28   : > { %p2097_p11 = pnand %p2096_p10, %p2095_p9 }
  0x29   : > { %p2102_p4 = por %p2101_p3, %p2100_p13 }
  0x2a   : > { %p2098_p12 = pneg %p2097_p11 }
  0x2b   : > { %p2104_p7 = por %p2103_p5, %p2102_p4 }
  0x2d   : > { %p2105_p2 = pnand %p2104_p7, %p2098_p12 }
  0x2f   : > { %2108 = shalt.err (!%p2105_p2)
}
  0x30   : > { %s2109_s3 = scalar_lea.vmem %s2475_s29, 256  ;;  %s2330_s18 = smov [#allocation9]  }
  0x31   : > { %p2110_p9 = scmp.ne.s32.totalorder %s2475_s29, %s2109_s3  ;;  %s2114_s20 = sshll.u32 %s2330_s18, 4  ;;  %s2115_s20 = int_to_ptr.vmem [resolvable:$false] %s2114_s20 }
  0x32   : > { %s2116_s7 = scalar_lea.vmem %s2115_s20, 512  ;;  %p2117_p6 = scmp.lt.s32.totalorder %s2475_s29, %s2115_s20 }
  0x33   : > { %p2112_p11 = pnand %p2110_p9, %p2096_p10  ;;  %p2118_p13 = scmp.lt.s32.totalorder %s2116_s7, %s2109_s3 }
  0x35   : > { %p2113_p1 = pneg %p2112_p11  ;;  %p2119_p3 = por %p2118_p13, %p2117_p6 }
  0x37   : > { %p2120_p4 = pnand %p2119_p3, %p2113_p1 }
  0x39   : > { %2123 = shalt.err (!%p2120_p4)
}
  0x3a   : > { %s3040_s4 = smov 768   ;;  %s3042_s6 = smov 128  }
  0x3b   : > { %s3044_s10 = smov 8   ;;  %s222_s11 = scalar_lea.vmem [#allocation11], %s2466_s9 }
  0x3c   : > { %1896 = dma.hbm_to_vmem [thread:$0]  (!%p2483_p8), %s2477_s19, 256, %s2475_s29, %s2495_s12, %s3040_s4, %s3042_s6, %s3044_s10  }
  0x3d   : > { %s232_s3 = sshll.u32 %s222_s11, 4  ;;  %p1445_p1 = scmp.ge.s32.totalorder %s2328_s24, 1  ;;  %s2527_s3 = int_to_ptr.vmem [resolvable:$true] %s232_s3 }
  0x3e   : > { %p240_p2 = scmp.lt.s32.totalorder %s2328_s24, 17  ;;  %s1434_s20 = sadd.s32 4294967294, %s2328_s24  }
  0x3f   : > { %s37_s7 = sadd.s32 1, %s2320_s22  ;;  %s50_s19 = sadd.s32 1, %s2300_s17 }
  0x40   : > { %p2530_p6 = pnand %p1445_p1, %p240_p2  ;;  %s3139_s7 = smov (!%p2433_p0, %s37_s7), %s2320_s22 }
  0x41   : > { %p57_p7 = scmp.ne.s32.totalorder %s2300_s17, %s2296_s16  ;;  %p63_p12 = scmp.ne.s32.totalorder %s2296_s16, %s2292_s15 }
  0x42   : > { %s3081_s18 = scalar_select %p2530_p6, 1, 0 }
  0x43   : > { %p39_p5 = scmp.ge.s32.totalorder %s3139_s7, 2  ;;  %p145_p9 = scmp.eq.s32.totalorder %s2430_s25, 15 }
  0x44   : > { %p3082_p11 = scmp.eq.s32.totalorder %s2328_s24, 0  ;;  %p3084_p3 = scmp.eq.s32.totalorder %s2430_s25, 0 }
  0x45   : > { %s3141_s7 = smov (%p39_p5, %s3139_s7), 0  ;;  %s3088_s9 = sadd.s32 1, %s2324_s23 }
  0x46   : > { %p2547_p13 = por %p3082_p11, %p57_p7  ;;  %p2556_p4 = por %p3084_p3, %p63_p12 }
  0x47   : > { %3087 = sst [smem:[#allocation27_spill]] %s3141_s7  ;;  %s3143_s9 = smov (!%p39_p5, %s3088_s9), %s2324_s23 }
  0x48   : > { %s3085_s27 = scalar_select %p2556_p4, 1, 0 }
  0x49   : > { %s46_s11 = ssub.s32 %s2320_s22, %s3141_s7  ;;  %p2567_p0 = por %p145_p9, %p57_p7 }
  0x4a   : > { %3086 = sst [smem:[#allocation26_spill]] %s3085_s27  ;;  %p43_p1 = scmp.ge.s32.totalorder %s3143_s9, 4 }
  0x4b   : > { %s3089_s4 = scalar_select %p2567_p0, 1, 0 }
  0x4c   : > { %p151_p2 = scmp.eq.s32.totalorder %s1434_s20, 15  ;;  %s3061_s6 = sand.u32 1, %s2300_s17  }
  0x4d   : > { %3090 = sst [smem:[#allocation28_spill]] %s3089_s4  ;;  %s3091_s10 = smul.u32 12, %s2324_s23 }
  0x4e   : > { %s3145_s9 = smov (%p43_p1, %s3143_s9), 0  ;;  %p2580_p5 = por %p151_p2, %p63_p12 }
  0x4f   : > { %s181_s1 = sadd.s32 %s2320_s22, %s3091_s10  ;;  %3092 = sst [smem:[#allocation29_spill]] %s3145_s9 }
  0x50   : > { %s3093_s7 = scalar_select %p2580_p5, 1, 0 }
  0x51   : > { %s45_s5 = ssub.s32 %s2324_s23, %s3145_s9  ;;  %s1437_s4 = sshll.u32 %s3061_s6, 4 }
  0x52   : > { %3094 = sst [smem:[#allocation30_spill]] %s3093_s7  ;;  %s47_s20 = sor.u32 %s46_s11, %s45_s5 }
  0x53   : > { %s3095_s13 = ssub.s32 %s2316_s21, %s3137_s26  ;;  %p48_p7 = scmp.eq.s32.totalorder %s47_s20, 0 }
  0x54   : > { %s75_s25 = sor.u32 %s3095_s13, %s45_s5  ;;  %s1440_s10 = sshll.u32 %s181_s1, 7 }
  0x55   : > { %p76_p9 = scmp.eq.s32.totalorder %s75_s25, 0  ;;  %s3096_s15 = sadd.s32 1, %s2288_s14 }
  0x56   : > { %s2592_s22 = scalar_select %p48_p7, %s2300_s17, %s50_s19  }
  0x57   : > { %s2597_s27 = scalar_select %p76_p9, %s2288_s14, %s3096_s15  }
  0x58   : > { %s2602_s9 = scalar_lea.hbm %s3030_s0, %s1440_s10  ;;  %s175_s23 = scalar_lea.vmem [#allocation6], %s1437_s4 }
  0x59   : > { %s184_s6 = sshll.u32 %s175_s23, 4  ;;  %p3097_p12 = scmp.lt.s32.totalorder %s2328_s24, 16  ;;  %s2604_s6 = int_to_ptr.vmem [resolvable:$true] %s184_s6 }
  0x5a   : > { %s2155_s1 = scalar_lea.hbm %s2490_s28, 768  ;;  %s2130_s25 = scalar_lea.hbm %s3032_s2, 6144 }
  0x5b   : > { %p2610_p11 = pnand %p3097_p12, %p2547_p13  ;;  %p2126_p3 = scmp.ne.s32.totalorder %s2493_s30, %s2155_s1 }
  0x5c   : > { %p2131_p7 = scmp.lt.u32.totalorder %s2493_s30, %s3032_s2  ;;  %p2132_p9 = scmp.lt.u32.totalorder %s2130_s25, %s2155_s1 }
  0x5d   : > { %p2128_p1 = pnand %p2126_p3, %p2096_p10  ;;  %p2134_p13 = scmp.lt.u32.totalorder %s2155_s1, %s2493_s30 }
  0x5e   : > { %p2133_p5 = por %p2132_p9, %p2131_p7 }
  0x5f   : > { %p2129_p2 = pneg %p2128_p1 }
  0x60   : > { %p2135_p12 = por %p2134_p13, %p2133_p5 }
  0x62   : > { %p2136_p0 = pnand %p2135_p12, %p2129_p2 }
  0x64   : > { %2139 = shalt.err (!%p2136_p0)
}
  0x65   : > { %s2140_s28 = scalar_lea.vmem %s2527_s3, 256  ;;  %s2334_s4 = smov [#allocation11]  }
  0x66   : > { %p2141_p3 = scmp.ne.s32.totalorder %s2527_s3, %s2140_s28  ;;  %s2145_s7 = sshll.u32 %s2334_s4, 4  ;;  %s2146_s7 = int_to_ptr.vmem [resolvable:$false] %s2145_s7 }
  0x67   : > { %s2147_s19 = scalar_lea.vmem %s2146_s7, 512  ;;  %p2148_p6 = scmp.lt.s32.totalorder %s2527_s3, %s2146_s7 }
  0x68   : > { %p2143_p1 = pnand %p2141_p3, %p2096_p10  ;;  %p2149_p7 = scmp.lt.s32.totalorder %s2147_s19, %s2140_s28 }
  0x6a   : > { %p2144_p4 = pneg %p2143_p1  ;;  %p2150_p9 = por %p2149_p7, %p2148_p6 }
  0x6c   : > { %p2151_p5 = pnand %p2150_p9, %p2144_p4 }
  0x6e   : > { %2154 = shalt.err (!%p2151_p5)
}
  0x6f   : > { %s3099_s29 = smov 8   ;;  %s3100_s11 = smov 128  }
  0x70   : > { %s3101_s20 = smov 768   ;;  %s3102_s10 = sand.u32 1, %s2300_s17  }
  0x71   : > { %1899 = dma.hbm_to_vmem [thread:$0]  (!%p2483_p8), %s2493_s30, 256, %s2527_s3, %s2495_s12, %s3101_s20, %s3100_s11, %s3099_s29  }
  0x72   : > { %s2643_s1 = scalar_lea.sflag [#allocation7], %s3102_s10  ;;  %s2156_s15 = scalar_lea.hbm %s2602_s9, 256 }
  0x73   : > { %p2157_p10 = scmp.ne.s32.totalorder %s2602_s9, %s2156_s15  ;;  %p2158_p6 = pneg %p2610_p11 }
  0x74   : > { %s2161_s25 = scalar_lea.hbm %s3030_s0, 6144  ;;  %p2162_p2 = scmp.lt.u32.totalorder %s2602_s9, %s3030_s0 }
  0x75   : > { %p2159_p4 = pnand %p2158_p6, %p2157_p10  ;;  %p2163_p8 = scmp.lt.u32.totalorder %s2161_s25, %s2156_s15 }
  0x76   : > { %p2165_p12 = scmp.lt.u32.totalorder %s2156_s15, %s2602_s9 }
  0x77   : > { %p2160_p0 = pneg %p2159_p4  ;;  %p2164_p13 = por %p2163_p8, %p2162_p2 }
  0x79   : > { %p2166_p3 = por %p2165_p12, %p2164_p13 }
  0x7b   : > { %p2167_p1 = pnand %p2166_p3, %p2160_p0 }
  0x7d   : > { %2170 = shalt.err (!%p2167_p1)
}
  0x7e   : > { %s2171_s30 = scalar_lea.vmem %s2604_s6, 256  ;;  %s2335_s12 = smov [#allocation6]  }
  0x7f   : > { %p2172_p7 = scmp.ne.s32.totalorder %s2604_s6, %s2171_s30  ;;  %s2176_s3 = sshll.u32 %s2335_s12, 4  ;;  %s2177_s3 = int_to_ptr.vmem [resolvable:$false] %s2176_s3 }
  0x80   : > { %s2178_s28 = scalar_lea.vmem %s2177_s3, 512  ;;  %p2179_p10 = scmp.lt.s32.totalorder %s2604_s6, %s2177_s3 }
  0x81   : > { %p2174_p9 = pnand %p2172_p7, %p2158_p6  ;;  %p2180_p4 = scmp.lt.s32.totalorder %s2178_s28, %s2171_s30 }
  0x83   : > { %p2175_p5 = pneg %p2174_p9  ;;  %p2181_p2 = por %p2180_p4, %p2179_p10 }
  0x85   : > { %p2182_p8 = pnand %p2181_p2, %p2175_p5 }
  0x87   : > { %2185 = shalt.err (!%p2182_p8)
}
  0x88   : > { %1893 = dma.hbm_to_vmem [thread:$0]  (!%p2610_p11), %s2602_s9, 256, %s2604_s6, %s2643_s1, %s3101_s20, %s3100_s11, %s3099_s29  }
  0x89   : > { %p3103_p6 = scmp.ne.s32.totalorder %s3081_s18, 0 }
  0x8a   : > { %s3104_s4 = sld [smem:[#allocation18_spill]] (!%p3103_p6)  ;;  %s3105_s7 = sld [smem:[#allocation26_spill]] (!%p3103_p6) }
  0x8b   : > { %244 = sbr.rel (%p3103_p6) target bundleno = 999 (0x3e7), region = 32 }
  0x90   : > { %s2677_s19 = sand.u32 (!%p3103_p6), 1, %s3104_s4   ;;  %p3106_p0 = scmp.ne.s32.totalorder (!%p3103_p6), %s3105_s7, 0 }
  0x91   : > { %s1446_s10 = sshll.u32 (!%p3103_p6), %s2677_s19, 4  ;;  %s247_s15 = scalar_lea.sflag (!%p3103_p6), [#allocation7], %s2677_s19 }
  0x92   : > { %s250_s8 = scalar_lea.vmem [#allocation6], %s1446_s10 }
  0x93   : > { %2267 = dma.done.wait (%p3106_p0), %s247_s15, 256  }
  0x94   : > { %2269 = vsyncadd (%p3106_p0), %s247_s15, 4294967040  ;;  %s3107_s13 = sld [smem:[#allocation24_spill]]  ;;  %s3108_s16 = sld [smem:[#allocation16_spill]] }
  0x95   : > { %s3109_s6 = sld [smem:[#allocation25_spill]] }
  0x9a   : > { %s255_s9 = sand.u32 1, %s3107_s13   ;;  %s257_s18 = sand.u32 1, %s3108_s16  }
  0x9b   : > { %s2687_s29 = sshll.u32 %s257_s18, 4  ;;  %s256_s11 = scalar_lea.sflag [#allocation10], %s255_s9 }
  0x9c   : > { %s259_s20 = scalar_lea.vmem [#allocation9], %s2687_s29  ;;  %p3110_p11 = scmp.ne.s32.totalorder %s3109_s6, 0 }
  0x9e   : > { %2271 = dma.done.wait (%p3110_p11), %s256_s11, 512  }
  0x9f   : > { %2273 = vsyncadd (%p3110_p11), %s256_s11, 4294966784  ;;  %s268_s1 = scalar_lea.vmem [#allocation11], %s2687_s29  ;;  %s2695_s25 = scalar_lea.vmem [#allocation12], %s1446_s10 }
  0xa0   : > { %s3111_s5 = sld [smem:[#allocation19_spill]] }
  0xa6   : > { %p1450_p13 = scmp.ne.s32.totalorder %s3111_s5, 0 }
  0xa7   : > { %v315_v0 = vld [vmem:[%s250_s8] sm:$0xff] (!%p1450_p13)  ;;  %v316_v1 = vld [vmem:[%s250_s8 + $0x8] sm:$0xff] (!%p1450_p13)  ;;  %v2336_v2 = vmov (!%p1450_p13), -inf   ;;  %v2337_v3 = vmov (!%p1450_p13), 0.0  }
  0xa8   : > { %308 = sbr.rel (%p1450_p13) target bundleno = 175 (0xaf), region = 48  ;;  %309 = vst [vmem:[#allocation2] sm:$0x1] (!%p1450_p13), %v2336_v2  ;;  %310 = vst [vmem:[#allocation2 + $0x1] sm:$0x1] (!%p1450_p13), %v2336_v2 }
  0xa9   : > { %311 = vst [vmem:[#allocation3] sm:$0x1] (!%p1450_p13), %v2337_v3  ;;  %312 = vst [vmem:[#allocation3 + $0x1] sm:$0x1] (!%p1450_p13), %v2337_v3  ;;  %v317_v4 = vmul.f32 (!%p1450_p13), 0.35355338, %v315_v0 }
  0xaa   : > { %313 = vst [vmem:[#allocation4] sm:$0xff] (!%p1450_p13), %v2337_v3  ;;  %314 = vst [vmem:[#allocation4 + $0x8] sm:$0xff] (!%p1450_p13), %v2337_v3  ;;  %v318_v5 = vmul.f32 (!%p1450_p13), 0.35355338, %v316_v1 }
  0xab   : > { %319 = vst [vmem:[#allocation5] sm:$0xff] (!%p1450_p13), %v317_v4 }
  0xac   : > { %320 = vst [vmem:[#allocation5 + $0x8] sm:$0xff] (!%p1450_p13), %v318_v5 }
  0xaf PF: > { %v323_v6 = vld [vmem:[%s259_s20] sm:$0xff]  ;;  %v324_v8 = vld [vmem:[%s259_s20 + $0x8] sm:$0xff]  ;;  %vm357_vm0 = vcmask 64512   ;;  %v2338_v42 = vmov 0.0|0.0   ;;  %vm2339_vm1 = vmmov 0   ;;  %v2340_v49 = vmov 0.0  }
  0xb0   : > { %325 = vxpose.xlu0.b32.start.end [1/1] (short) %v323_v6, 128  ;;  %s3112_s23 = sld [smem:[#allocation19_spill]] }
  0xb2   : > { %v321_v7 = vld [vmem:[#allocation5] sm:$0xff] }
  0xb3   : > { %1593 = vmatprep.subr.mxu0 %v321_v7  ;;  %v322_v9 = vld [vmem:[#allocation5 + $0x8] sm:$0xff] }
  0xb4   : > { %1594 = vmatpush3.msra.mxu0 %v321_v7  ;;  %1619 = vmatprep.subr.mxu1 %v322_v9 }
  0xb5   : > { %1620 = vmatpush3.msra.mxu1 %v322_v9  ;;  %1785 = vmatprep.subr.bf16.mxu0 %v2338_v42 }
  0xb6   : > { %1809 = vmatprep.subr.bf16.mxu1 %v2338_v42  ;;  %p1483_p12 = scmp.ne.s32.totalorder %s3112_s23, 1 }
  0xed   : > { %551 = vxpose.xlu0.b32.start.end [1/1] (short) %v324_v8, 128 }
 0x130   : > { %v341_v10 = vpop.trf.xlu0 }
 0x131   : > { %1595 = vmatprep.mubr.msk.f32.mxu0 %vm357_vm0, %v341_v10 }
 0x134   : > { %v342_v11 = vpop.trf.xlu0 }
 0x135   : > { %1596 = vmatmul.mubr.msk.f32.vlgmr.msra.gmra.mrb[0].mxu0 %vm357_vm0, %v342_v11 }
 0x138   : > { %v343_v12 = vpop.trf.xlu0 }
 0x139   : > { %1598 = vmatprep.mubr.msk.f32.mxu0 %vm357_vm0, %v343_v12 }
 0x13c   : > { %v344_v13 = vpop.trf.xlu0 }
 0x13d   : > { %1599 = vmatmul.mubr.msk.f32.gmra.mrb[2].mxu0 %vm357_vm0, %v344_v13  ;;  %v830_v13 = vlaneseq }
 0x140   : > { %v345_v14 = vpop.trf.xlu0 }
 0x141   : > { %1601 = vmatprep.mubr.msk.f32.mxu0 %vm357_vm0, %v345_v14 }
 0x144   : > { %v346_v15 = vpop.trf.xlu0 }
 0x145   : > { %1602 = vmatmul.mubr.msk.f32.gmra.mrb[4].mxu0 %vm357_vm0, %v346_v15 }
 0x148   : > { %v347_v16 = vpop.trf.xlu0 }
 0x149   : > { %1604 = vmatprep.mubr.msk.f32.mxu0 %vm357_vm0, %v347_v16 }
 0x14c   : > { %v348_v17 = vpop.trf.xlu0 }
 0x14d   : > { %1605 = vmatmul.mubr.msk.f32.gmra.mrb[6].mxu0 %vm357_vm0, %v348_v17 }
 0x150   : > { %v349_v18 = vpop.trf.xlu0 }
 0x151   : > { %1607 = vmatprep.mubr.msk.f32.mxu0 %vm357_vm0, %v349_v18  ;;  %v831_v18 = vshrl.u32 %v830_v13, 7 }
 0x154   : > { %v350_v19 = vpop.trf.xlu0 }
 0x155   : > { %1608 = vmatmul.mubr.msk.f32.gmra.mrb[8].mxu0 %vm357_vm0, %v350_v19 }
 0x158   : > { %v351_v20 = vpop.trf.xlu0 }
 0x159   : > { %1610 = vmatprep.mubr.msk.f32.mxu0 %vm357_vm0, %v351_v20  ;;  %v2785_v20 = vld [vmem:[#allocation2] sm:$0x1] }
 0x15c   : > { %v352_v21 = vpop.trf.xlu0 }
 0x15d   : > { %1611 = vmatmul.mubr.msk.f32.gmra.mrb[10].mxu0 %vm357_vm0, %v352_v21 }
 0x160   : > { %v353_v22 = vpop.trf.xlu0 }
 0x161   : > { %1613 = vmatprep.mubr.msk.f32.mxu0 %vm357_vm0, %v353_v22  ;;  %v2787_v22 = vsub.s32 0, %v831_v18 }
 0x164   : > { %v354_v23 = vpop.trf.xlu0 }
 0x165   : > { %1614 = vmatmul.mubr.msk.f32.gmra.mrb[12].mxu0 %vm357_vm0, %v354_v23 }
 0x168   : > { %v355_v24 = vpop.trf.xlu0 }
 0x169   : > { %1616 = vmatprep.mubr.msk.f32.mxu0 %vm357_vm0, %v355_v24 }
 0x16c   : > { %v356_v25 = vpop.trf.xlu0 }
 0x16d   : > { %1617 = vmatmul.mubr.msk.f32.gmra.mrb[14].mxu0 %vm357_vm0, %v356_v25 }
 0x16e   : > { %1677 = vmatprep.mubr.msk.f32.mxu0 %vm2339_vm1, %v2340_v49 }
 0x170   : > { %v567_v26 = vpop.trf.xlu0 }
 0x171   : > { %1621 = vmatprep.mubr.msk.f32.mxu1 %vm357_vm0, %v567_v26 }
 0x174   : > { %v568_v27 = vpop.trf.xlu0 }
 0x175   : > { %1622 = vmatmul.mubr.msk.f32.vlgmr.msra.gmra.mrb[0].mxu1 %vm357_vm0, %v568_v27 }
 0x178   : > { %v569_v28 = vpop.trf.xlu0 }
 0x179   : > { %1624 = vmatprep.mubr.msk.f32.mxu1 %vm357_vm0, %v569_v28 }
 0x17c   : > { %v570_v29 = vpop.trf.xlu0 }
 0x17d   : > { %1625 = vmatmul.mubr.msk.f32.gmra.mrb[2].mxu1 %vm357_vm0, %v570_v29 }
 0x180   : > { %v571_v30 = vpop.trf.xlu0 }
 0x181   : > { %1627 = vmatprep.mubr.msk.f32.mxu1 %vm357_vm0, %v571_v30 }
 0x184   : > { %v572_v31 = vpop.trf.xlu0 }
 0x185   : > { %1628 = vmatmul.mubr.msk.f32.gmra.mrb[4].mxu1 %vm357_vm0, %v572_v31 }
 0x188   : > { %v573_v32 = vpop.trf.xlu0 }
 0x189   : > { %1630 = vmatprep.mubr.msk.f32.mxu1 %vm357_vm0, %v573_v32 }
 0x18c   : > { %v574_v33 = vpop.trf.xlu0 }
 0x18d   : > { %1631 = vmatmul.mubr.msk.f32.gmra.mrb[6].mxu1 %vm357_vm0, %v574_v33 }
 0x190   : > { %v575_v34 = vpop.trf.xlu0 }
 0x191   : > { %1633 = vmatprep.mubr.msk.f32.mxu1 %vm357_vm0, %v575_v34 }
 0x194   : > { %v576_v35 = vpop.trf.xlu0 }
 0x195   : > { %1634 = vmatmul.mubr.msk.f32.gmra.mrb[8].mxu1 %vm357_vm0, %v576_v35 }
 0x198   : > { %v577_v36 = vpop.trf.xlu0 }
 0x199   : > { %1636 = vmatprep.mubr.msk.f32.mxu1 %vm357_vm0, %v577_v36 }
 0x19c   : > { %v578_v37 = vpop.trf.xlu0 }
 0x19d   : > { %1637 = vmatmul.mubr.msk.f32.gmra.mrb[10].mxu1 %vm357_vm0, %v578_v37 }
 0x1a0   : > { %v579_v38 = vpop.trf.xlu0 }
 0x1a1   : > { %1639 = vmatprep.mubr.msk.f32.mxu1 %vm357_vm0, %v579_v38 }
 0x1a4   : > { %v580_v39 = vpop.trf.xlu0 }
 0x1a5   : > { %1640 = vmatmul.mubr.msk.f32.gmra.mrb[12].mxu1 %vm357_vm0, %v580_v39 }
 0x1a8   : > { %v581_v40 = vpop.trf.xlu0 }
 0x1a9   : > { %1642 = vmatprep.mubr.msk.f32.mxu1 %vm357_vm0, %v581_v40 }
 0x1ac   : > { %v582_v41 = vpop.trf.xlu0 }
 0x1ad   : > { %1643 = vmatmul.mubr.msk.f32.gmra.mrb[14].mxu1 %vm357_vm0, %v582_v41 }
 0x1ae   : > { %1712 = vmatprep.mubr.msk.f32.mxu1 %vm2339_vm1, %v2340_v49 }
 0x208   : > { %v2732_v43 = vpop.f32.mrb[0].mxu0 }
 0x209   : > { %v2734_v44 = vpop.f32.mrb[1].mxu0 }
 0x210   : > { %v2736_v45 = vpop.f32.mrb[2].mxu0 }
 0x211   : > { %v779_v46 = vmax.f32 %v2732_v43, %v2736_v45  ;;  %v2740_v47 = vpop.f32.mrb[3].mxu0 }
 0x212   : > { %v778_v48 = vmax.f32 %v2734_v44, %v2740_v47 }
 0x218   : > { %v2748_v50 = vpop.f32.mrb[4].mxu0 }
 0x219   : > { %v781_v51 = vmax.f32 %v779_v46, %v2748_v50  ;;  %v2751_v52 = vpop.f32.mrb[5].mxu0 }
 0x21a   : > { %v780_v53 = vmax.f32 %v778_v48, %v2751_v52 }
 0x220   : > { %v2754_v54 = vpop.f32.mrb[6].mxu0 }
 0x221   : > { %v783_v55 = vmax.f32 %v781_v51, %v2754_v54  ;;  %v2757_v56 = vpop.f32.mrb[7].mxu0 }
 0x222   : > { %v782_v57 = vmax.f32 %v780_v53, %v2757_v56 }
 0x228   : > { %v2760_v58 = vpop.f32.mrb[8].mxu0 }
 0x229   : > { %v785_v59 = vmax.f32 %v783_v55, %v2760_v58  ;;  %v2763_v60 = vpop.f32.mrb[9].mxu0 }
 0x22a   : > { %v784_v61 = vmax.f32 %v782_v57, %v2763_v60 }
 0x230   : > { %v2766_v62 = vpop.f32.mrb[10].mxu0 }
 0x231   : > { %v787_v63 = vmax.f32 %v785_v59, %v2766_v62  ;;  %v2769_v0 = vpop.f32.mrb[11].mxu0 }
 0x232   : > { %v786_v1 = vmax.f32 %v784_v61, %v2769_v0 }
 0x238   : > { %v2772_v2 = vpop.f32.mrb[12].mxu0 }
 0x239   : > { %v789_v3 = vmax.f32 %v787_v63, %v2772_v2  ;;  %v2775_v4 = vpop.f32.mrb[13].mxu0 }
 0x23a   : > { %v788_v5 = vmax.f32 %v786_v1, %v2775_v4 }
 0x240   : > { %v2778_v6 = vpop.f32.mrb[14].mxu0 }
 0x241   : > { %v791_v7 = vmax.f32 %v789_v3, %v2778_v6  ;;  %v542_v8 = vpop.f32.mrb[15].mxu0 }
 0x242   : > { %v790_v9 = vmax.f32 %v788_v5, %v542_v8 }
 0x244   : > { %v792_v10 = vmax.f32 %v790_v9, %v791_v7 }
 0x246   : > { %v793_v11 = vrot.slane %v792_v10, 4 }
 0x248   : > { %v794_v12 = vmax.f32 %v792_v10, %v793_v11  ;;  %v2781_v14 = vpop.f32.mrb[0].mxu1 }
 0x249   : > { %v2783_v15 = vpop.f32.mrb[1].mxu1 }
 0x24a   : > { %v795_v16 = vrot.slane %v794_v12, 2 }
 0x24c   : > { %v796_v17 = vmax.f32 %v794_v12, %v795_v16 }
 0x24e   : > { %v797_v19 = vrot.slane %v796_v17, 1 }
 0x250   : > { %v798_v21 = vmax.f32 %v796_v17, %v797_v19  ;;  %v2789_v23 = vpop.f32.mrb[2].mxu1 }
 0x251   : > { %v800_v24 = vmax.f32 %v2781_v14, %v2789_v23  ;;  %v2793_v25 = vpop.f32.mrb[3].mxu1 }
 0x252   : > { %v2796_v26 = vmax.f32 %v2785_v20, %v798_v21  ;;  %v799_v27 = vmax.f32 %v2783_v15, %v2793_v25 }
 0x254   : > { %v833_v28 = vrot.slane %v2796_v26, %v2787_v22  ;;  %1246 = vst [vmem:[#allocation2] sm:$0x1] %v2796_v26  ;;  %v822_v29 = vsub.f32 %v2785_v20, %v2796_v26 }
 0x256   : > { %v854_v30 = vsub.f32 %v542_v8, %v833_v28  ;;  %v840_v31 = vsub.f32 %v2734_v44, %v833_v28  ;;  %v841_v32 = vsub.f32 %v2732_v43, %v833_v28  ;;  %v842_v33 = vsub.f32 %v2740_v47, %v833_v28 }
 0x257   : > { %v843_v34 = vsub.f32 %v2736_v45, %v833_v28  ;;  %v844_v35 = vsub.f32 %v2751_v52, %v833_v28  ;;  %v845_v36 = vsub.f32 %v2748_v50, %v833_v28  ;;  %v846_v37 = vsub.f32 %v2757_v56, %v833_v28 }
 0x258   : > { %v900_v38 = vmul.f32 1.442695, %v854_v30  ;;  %v2812_v39 = vpop.f32.mrb[4].mxu1  ;;  %v872_v40 = vmul.f32 1.442695, %v840_v31  ;;  %v847_v41 = vsub.f32 %v2754_v54, %v833_v28  ;;  %v848_v44 = vsub.f32 %v2763_v60, %v833_v28 }
 0x259   : > { %v802_v43 = vmax.f32 %v800_v24, %v2812_v39  ;;  %v2817_v46 = vpop.f32.mrb[5].mxu1  ;;  %v874_v47 = vmul.f32 1.442695, %v841_v32  ;;  %v876_v45 = vmul.f32 1.442695, %v842_v33  ;;  %v849_v48 = vsub.f32 %v2760_v58, %v833_v28 }
 0x25a   : > { %2022 = vpow2.f32 %v900_v38  ;;  %v801_v50 = vmax.f32 %v799_v27, %v2817_v46  ;;  %v878_v51 = vmul.f32 1.442695, %v843_v34  ;;  %v880_v52 = vmul.f32 1.442695, %v844_v35 }
 0x25b   : > { %2024 = vpow2.f32 %v872_v40  ;;  %v882_v53 = vmul.f32 1.442695, %v845_v36  ;;  %v884_v55 = vmul.f32 1.442695, %v846_v37  ;;  %v850_v54 = vsub.f32 %v2769_v0, %v833_v28 }
 0x25c   : > { %2026 = vpow2.f32 %v874_v47  ;;  %v851_v56 = vsub.f32 %v2766_v62, %v833_v28  ;;  %v852_v57 = vsub.f32 %v2775_v4, %v833_v28  ;;  %v853_v59 = vsub.f32 %v2772_v2, %v833_v28 }
 0x25d   : > { %2028 = vpow2.f32 %v876_v45  ;;  %v886_v58 = vmul.f32 1.442695, %v847_v41  ;;  %v855_v60 = vsub.f32 %v2778_v6, %v833_v28  ;;  %v888_v61 = vmul.f32 1.442695, %v848_v44 }
 0x25e   : > { %2030 = vpow2.f32 %v878_v51  ;;  %v890_v1 = vmul.f32 1.442695, %v849_v48  ;;  %v892_v62 = vmul.f32 1.442695, %v850_v54  ;;  %v894_v2 = vmul.f32 1.442695, %v851_v56 }
 0x25f   : > { %2032 = vpow2.f32 %v880_v52  ;;  %v896_v5 = vmul.f32 1.442695, %v852_v57  ;;  %v898_v6 = vmul.f32 1.442695, %v853_v59  ;;  %v902_v9 = vmul.f32 1.442695, %v855_v60 }
 0x260   : > { %v2826_v63 = vpop.f32.mrb[6].mxu1  ;;  %2034 = vpow2.f32 %v882_v53 }
 0x261   : > { %v804_v3 = vmax.f32 %v802_v43, %v2826_v63  ;;  %v2829_v0 = vpop.f32.mrb[7].mxu1  ;;  %2036 = vpow2.f32 %v884_v55 }
 0x262   : > { %v803_v4 = vmax.f32 %v801_v50, %v2829_v0  ;;  %2038 = vpow2.f32 %v886_v58 }
 0x263   : > { %2040 = vpow2.f32 %v888_v61 }
 0x264   : > { %v2023_v7 = vpop.eup %2022  ;;  %2042 = vpow2.f32 %v890_v1 }
 0x265   : > { %v2025_v8 = vpop.eup %2024  ;;  %2044 = vpow2.f32 %v892_v62 }
 0x266   : > { %v2027_v10 = vpop.eup %2026  ;;  %2046 = vpow2.f32 %v894_v2 }
 0x267   : > { %v2029_v11 = vpop.eup %2028  ;;  %v1786_v12 = vpack.c.bf16 %v2027_v10, %v2025_v8  ;;  %2048 = vpow2.f32 %v896_v5  ;;  %v2878_v5 = vld [vmem:[#allocation2 + $0x1] sm:$0x1] }
 0x268   : > { %v2031_v13 = vpop.eup %2030  ;;  %v2832_v16 = vpop.f32.mrb[8].mxu1  ;;  %2050 = vpow2.f32 %v898_v6 }
 0x269   : > { %v2033_v17 = vpop.eup %2032  ;;  %1787 = vmatpush3.bf16.msra.mxu0 %v1786_v12  ;;  %v806_v18 = vmax.f32 %v804_v3, %v2832_v16  ;;  %v2835_v19 = vpop.f32.mrb[9].mxu1  ;;  %v1789_v21 = vpack.c.bf16 %v2031_v13, %v2029_v11  ;;  %2052 = vpow2.f32 %v902_v9  ;;  %v2341_v3 = vmov 1.0  }
 0x26a   : > { %v2035_v24 = vpop.eup %2034  ;;  %v805_v27 = vmax.f32 %v803_v4, %v2835_v19  ;;  %1788 = vmatprep.subr.bf16.mxu0 %v2338_v42 }
 0x26b   : > { %v2037_v28 = vpop.eup %2036  ;;  %v1792_v30 = vpack.c.bf16 %v2035_v24, %v2033_v17 }
 0x26c   : > { %v2039_v31 = vpop.eup %2038 }
 0x26d   : > { %v2041_v32 = vpop.eup %2040  ;;  %1790 = vmatpush3.bf16.msra.mxu0 %v1789_v21  ;;  %v1795_v33 = vpack.c.bf16 %v2039_v31, %v2037_v28 }
 0x26e   : > { %v2043_v34 = vpop.eup %2042  ;;  %1791 = vmatprep.subr.bf16.mxu0 %v2338_v42 }
 0x26f   : > { %v2045_v35 = vpop.eup %2044  ;;  %v2840_v36 = vpack.c.bf16 %v2043_v34, %v2041_v32 }
 0x270   : > { %v2047_v37 = vpop.eup %2046  ;;  %v2842_v38 = vpop.f32.mrb[10].mxu1 }
 0x271   : > { %v2049_v40 = vpop.eup %2048  ;;  %1793 = vmatpush3.bf16.msra.mxu0 %v1792_v30  ;;  %v808_v41 = vmax.f32 %v806_v18, %v2842_v38  ;;  %v2845_v44 = vpop.f32.mrb[11].mxu1  ;;  %v2847_v43 = vpack.c.bf16 %v2047_v37, %v2045_v35 }
 0x272   : > { %v2051_v47 = vpop.eup %2050  ;;  %v807_v45 = vmax.f32 %v805_v27, %v2845_v44  ;;  %1794 = vmatprep.subr.bf16.mxu0 %v2338_v42 }
 0x273   : > { %v2053_v48 = vpop.eup %2052  ;;  %v2851_v50 = vpack.c.bf16 %v2051_v47, %v2049_v40  ;;  %v1084_v47 = vld [vmem:[%s268_s1] sm:$0xff] }
 0x274   : > { %v2853_v51 = vpack.c.bf16 %v2053_v48, %v2023_v7 }
 0x275   : > { %1796 = vmatpush3.bf16.msra.mxu0 %v1795_v33 }
 0x276   : > { %1797 = vmatprep.subr.bf16.mxu0 %v2338_v42 }
 0x278   : > { %v2856_v52 = vpop.f32.mrb[12].mxu1 }
 0x279   : > { %1799 = vmatpush3.bf16.msra.mxu0 %v2840_v36  ;;  %v810_v53 = vmax.f32 %v808_v41, %v2856_v52  ;;  %v2860_v55 = vpop.f32.mrb[13].mxu1 }
 0x27a   : > { %v809_v54 = vmax.f32 %v807_v45, %v2860_v55  ;;  %1800 = vmatprep.subr.bf16.mxu0 %v2338_v42 }
 0x27d   : > { %1802 = vmatpush3.bf16.msra.mxu0 %v2847_v43 }
 0x27e   : > { %1803 = vmatprep.subr.bf16.mxu0 %v2338_v42 }
 0x280   : > { %v2866_v56 = vpop.f32.mrb[14].mxu1 }
 0x281   : > { %1805 = vmatpush3.bf16.msra.mxu0 %v2851_v50  ;;  %v812_v57 = vmax.f32 %v810_v53, %v2866_v56  ;;  %v767_v59 = vpop.f32.mrb[15].mxu1 }
 0x282   : > { %v811_v58 = vmax.f32 %v809_v54, %v767_v59  ;;  %1806 = vmatprep.subr.bf16.mxu0 %v2338_v42 }
 0x284   : > { %v813_v60 = vmax.f32 %v811_v58, %v812_v57 }
 0x285   : > { %1808 = vmatpush3.bf16.msra.mxu0 %v2853_v51 }
 0x286   : > { %v814_v61 = vrot.slane %v813_v60, 4  ;;  %1833 = vmatprep.subr.bf16.mxu0 %v2338_v42 }
 0x288   : > { %v815_v1 = vmax.f32 %v813_v60, %v814_v61  ;;  %1678 = vmatmul.mubr.f32.vlgmr.msra.gmra.mrb[16].mxu0 %v2341_v3 }
 0x289   : > { %1835 = vmatpush3.bf16.msra.mxu0 %v1786_v12  ;;  %1747 = vmatprep.mubr.msk.f32.mxu0 %vm2339_vm1, %v2340_v49 }
 0x28a   : > { %v816_v62 = vrot.slane %v815_v1, 2  ;;  %1836 = vmatprep.subr.bf16.mxu0 %v2338_v42 }
 0x28c   : > { %v817_v4 = vmax.f32 %v815_v1, %v816_v62 }
 0x28d   : > { %1838 = vmatpush3.bf16.msra.mxu0 %v1789_v21 }
 0x28e   : > { %v818_v2 = vrot.slane %v817_v4, 1  ;;  %1839 = vmatprep.subr.bf16.mxu0 %v2338_v42 }
 0x290   : > { %v819_v7 = vmax.f32 %v817_v4, %v818_v2 }
 0x291   : > { %1841 = vmatpush3.bf16.msra.mxu0 %v1792_v30 }
 0x292   : > { %v2881_v6 = vmax.f32 %v2878_v5, %v819_v7  ;;  %1842 = vmatprep.subr.bf16.mxu0 %v2338_v42 }
 0x294   : > { %v837_v8 = vrot.slane %v2881_v6, %v2787_v22  ;;  %1247 = vst [vmem:[#allocation2 + $0x1] sm:$0x1] %v2881_v6  ;;  %v823_v9 = vsub.f32 %v2878_v5, %v2881_v6 }
 0x295   : > { %1844 = vmatpush3.bf16.msra.mxu0 %v1795_v33 }
 0x296   : > { %v870_v10 = vsub.f32 %v767_v59, %v837_v8  ;;  %1845 = vmatprep.subr.bf16.mxu0 %v2338_v42  ;;  %v856_v11 = vsub.f32 %v2783_v15, %v837_v8  ;;  %v857_v12 = vsub.f32 %v2781_v14, %v837_v8  ;;  %v858_v13 = vsub.f32 %v2793_v25, %v837_v8 }
 0x297   : > { %v859_v17 = vsub.f32 %v2789_v23, %v837_v8  ;;  %v860_v18 = vsub.f32 %v2817_v46, %v837_v8  ;;  %v861_v21 = vsub.f32 %v2812_v39, %v837_v8  ;;  %v862_v24 = vsub.f32 %v2829_v0, %v837_v8 }
 0x298   : > { %v932_v27 = vmul.f32 1.442695, %v870_v10  ;;  %v904_v28 = vmul.f32 1.442695, %v856_v11  ;;  %v906_v30 = vmul.f32 1.442695, %v857_v12  ;;  %v863_v31 = vsub.f32 %v2826_v63, %v837_v8 }
 0x299   : > { %1847 = vmatpush3.bf16.msra.mxu0 %v2840_v36  ;;  %v908_v15 = vmul.f32 1.442695, %v858_v13  ;;  %v864_v14 = vsub.f32 %v2835_v19, %v837_v8  ;;  %v910_v23 = vmul.f32 1.442695, %v859_v17  ;;  %v912_v25 = vmul.f32 1.442695, %v860_v18 }
 0x29a   : > { %2054 = vpow2.f32 %v932_v27  ;;  %1848 = vmatprep.subr.bf16.mxu0 %v2338_v42  ;;  %v914_v46 = vmul.f32 1.442695, %v861_v21  ;;  %v865_v39 = vsub.f32 %v2832_v16, %v837_v8  ;;  %v866_v0 = vsub.f32 %v2845_v44, %v837_v8  ;;  %v1076_v17 = vld [vmem:[#allocation3] sm:$0x1] }
 0x29b   : > { %2056 = vpow2.f32 %v904_v28  ;;  %v867_v32 = vsub.f32 %v2842_v38, %v837_v8  ;;  %v868_v63 = vsub.f32 %v2860_v55, %v837_v8  ;;  %v869_v33 = vsub.f32 %v2856_v52, %v837_v8 }
 0x29c   : > { %2058 = vpow2.f32 %v906_v30  ;;  %v916_v19 = vmul.f32 1.442695, %v862_v24  ;;  %v871_v34 = vsub.f32 %v2866_v56, %v837_v8  ;;  %v918_v35 = vmul.f32 1.442695, %v863_v31  ;;  %v1226_v30 = vld [vmem:[#allocation4] sm:$0xff] }
 0x29d   : > { %1850 = vmatpush3.bf16.msra.mxu0 %v2847_v43  ;;  %2060 = vpow2.f32 %v908_v15  ;;  %v920_v16 = vmul.f32 1.442695, %v864_v14  ;;  %v922_v36 = vmul.f32 1.442695, %v865_v39  ;;  %v924_v37 = vmul.f32 1.442695, %v866_v0 }
 0x29e   : > { %1851 = vmatprep.subr.bf16.mxu0 %v2338_v42  ;;  %2062 = vpow2.f32 %v910_v23  ;;  %v926_v38 = vmul.f32 1.442695, %v867_v32  ;;  %v928_v40 = vmul.f32 1.442695, %v868_v63  ;;  %v930_v44 = vmul.f32 1.442695, %v869_v33 }
 0x29f   : > { %2064 = vpow2.f32 %v912_v25  ;;  %v934_v45 = vmul.f32 1.442695, %v871_v34  ;;  %v826_v20 = vmul.f32 1.442695, %v823_v9  ;;  %v1227_v32 = vld [vmem:[#allocation4 + $0x8] sm:$0xff] }
 0x2a0   : > { %2066 = vpow2.f32 %v914_v46 }
 0x2a1   : > { %1853 = vmatpush3.bf16.msra.mxu0 %v2851_v50  ;;  %2068 = vpow2.f32 %v916_v19 }
 0x2a2   : > { %1854 = vmatprep.subr.bf16.mxu0 %v2338_v42  ;;  %2070 = vpow2.f32 %v918_v35 }
 0x2a3   : > { %2072 = vpow2.f32 %v920_v16 }
 0x2a4   : > { %v2055_v41 = vpop.eup %2054  ;;  %2074 = vpow2.f32 %v922_v36 }
 0x2a5   : > { %v2057_v43 = vpop.eup %2056  ;;  %1856 = vmatpush3.bf16.msra.mxu0 %v2853_v51  ;;  %2076 = vpow2.f32 %v924_v37 }
 0x2a6   : > { %v2059_v48 = vpop.eup %2058  ;;  %2078 = vpow2.f32 %v926_v38 }
 0x2a7   : > { %v2061_v50 = vpop.eup %2060  ;;  %v1810_v52 = vpack.c.bf16 %v2059_v48, %v2057_v43  ;;  %2080 = vpow2.f32 %v928_v40 }
 0x2a8   : > { %v2063_v53 = vpop.eup %2062  ;;  %1748 = vmatmul.mubr.f32.vlgmr.msra.gmra.mrb[18].mxu0 %v1084_v47  ;;  %2082 = vpow2.f32 %v930_v44 }
 0x2a9   : > { %v2065_v55 = vpop.eup %2064  ;;  %1811 = vmatpush3.bf16.msra.mxu1 %v1810_v52  ;;  %v1813_v54 = vpack.c.bf16 %v2063_v53, %v2061_v50  ;;  %2084 = vpow2.f32 %v934_v45 }
 0x2aa   : > { %v2067_v56 = vpop.eup %2066  ;;  %1812 = vmatprep.subr.bf16.mxu1 %v2338_v42 }
 0x2ab   : > { %v2069_v51 = vpop.eup %2068  ;;  %v1816_v57 = vpack.c.bf16 %v2067_v56, %v2065_v55 }
 0x2ac   : > { %v2071_v59 = vpop.eup %2070 }
 0x2ad   : > { %v2073_v58 = vpop.eup %2072  ;;  %1814 = vmatpush3.bf16.msra.mxu1 %v1813_v54  ;;  %v1819_v60 = vpack.c.bf16 %v2071_v59, %v2069_v51 }
 0x2ae   : > { %v2075_v61 = vpop.eup %2074  ;;  %1815 = vmatprep.subr.bf16.mxu1 %v2338_v42 }
 0x2af   : > { %v2077_v1 = vpop.eup %2076  ;;  %v1822_v62 = vpack.c.bf16 %v2075_v61, %v2073_v58 }
 0x2b0   : > { %v2079_v4 = vpop.eup %2078 }
 0x2b1   : > { %v2081_v2 = vpop.eup %2080  ;;  %1817 = vmatpush3.bf16.msra.mxu1 %v1816_v57  ;;  %v1825_v7 = vpack.c.bf16 %v2079_v4, %v2077_v1 }
 0x2b2   : > { %v2083_v8 = vpop.eup %2082  ;;  %1818 = vmatprep.subr.bf16.mxu1 %v2338_v42 }
 0x2b3   : > { %v2085_v10 = vpop.eup %2084  ;;  %v1828_v11 = vpack.c.bf16 %v2083_v8, %v2081_v2 }
 0x2b4   : > { %v1831_v12 = vpack.c.bf16 %v2085_v10, %v2055_v41 }
 0x2b5   : > { %1820 = vmatpush3.bf16.msra.mxu1 %v1819_v60 }
 0x2b6   : > { %1821 = vmatprep.subr.bf16.mxu1 %v2338_v42 }
 0x2b9   : > { %1823 = vmatpush3.bf16.msra.mxu1 %v1822_v62 }
 0x2ba   : > { %1824 = vmatprep.subr.bf16.mxu1 %v2338_v42 }
 0x2bd   : > { %1826 = vmatpush3.bf16.msra.mxu1 %v1825_v7 }
 0x2be   : > { %1827 = vmatprep.subr.bf16.mxu1 %v2338_v42 }
 0x2c1   : > { %1829 = vmatpush3.bf16.msra.mxu1 %v1828_v11 }
 0x2c2   : > { %1830 = vmatprep.subr.bf16.mxu1 %v2338_v42 }
 0x2c5   : > { %1832 = vmatpush3.bf16.msra.mxu1 %v1831_v12 }
 0x2c6   : > { %1857 = vmatprep.subr.bf16.mxu1 %v2338_v42 }
 0x2c8   : > { %1713 = vmatmul.mubr.f32.vlgmr.msra.gmra.mrb[16].mxu1 %v2341_v3  ;;  %v824_v3 = vmul.f32 1.442695, %v822_v29  ;;  %v1077_v29 = vld [vmem:[#allocation3 + $0x1] sm:$0x1] }
 0x2c9   : > { %1859 = vmatpush3.bf16.msra.mxu1 %v1810_v52  ;;  %1782 = vmatprep.mubr.msk.f32.mxu1 %vm2339_vm1, %v2340_v49  ;;  %v1085_v49 = vld [vmem:[%s268_s1 + $0x8] sm:$0xff] }
 0x2ca   : > { %1860 = vmatprep.subr.bf16.mxu1 %v2338_v42  ;;  %2086 = vpow2.f32 %v824_v3 }
 0x2cb   : > { %2088 = vpow2.f32 %v826_v20 }
 0x2cd   : > { %1862 = vmatpush3.bf16.msra.mxu1 %v1813_v54 }
 0x2ce   : > { %1863 = vmatprep.subr.bf16.mxu1 %v2338_v42 }
 0x2d1   : > { %1865 = vmatpush3.bf16.msra.mxu1 %v1816_v57 }
 0x2d2   : > { %1866 = vmatprep.subr.bf16.mxu1 %v2338_v42 }
 0x2d4   : > { %v2087_v13 = vpop.eup %2086 }
 0x2d5   : > { %1868 = vmatpush3.bf16.msra.mxu1 %v1819_v60  ;;  %v1078_v18 = vmul.f32 %v2087_v13, %v1076_v17  ;;  %v1233_v28 = vrot.slane %v2087_v13, %v2787_v22  ;;  %v2089_v26 = vpop.eup %2088 }
 0x2d6   : > { %1869 = vmatprep.subr.bf16.mxu1 %v2338_v42  ;;  %v1079_v23 = vmul.f32 %v2089_v26, %v1077_v29  ;;  %v1237_v0 = vrot.slane %v2089_v26, %v2787_v22 }
 0x2d8   : > { %v1241_v63 = vmul.f32 %v1237_v0, %v1227_v32 }
 0x2d9   : > { %1871 = vmatpush3.bf16.msra.mxu1 %v1822_v62 }
 0x2da   : > { %1872 = vmatprep.subr.bf16.mxu1 %v2338_v42 }
 0x2dd   : > { %1874 = vmatpush3.bf16.msra.mxu1 %v1825_v7 }
 0x2de   : > { %1875 = vmatprep.subr.bf16.mxu1 %v2338_v42 }
 0x2e1   : > { %1877 = vmatpush3.bf16.msra.mxu1 %v1828_v11 }
 0x2e2   : > { %1878 = vmatprep.subr.bf16.mxu1 %v2338_v42  ;;  %v1240_v42 = vmul.f32 %v1233_v28, %v1226_v30 }
 0x2e5   : > { %1880 = vmatpush3.bf16.msra.mxu1 %v1831_v12 }
 0x2e8   : > { %1783 = vmatmul.mubr.f32.vlgmr.msra.gmra.mrb[18].mxu1 %v1085_v49 }
 0x35b   : > { %v1002_v21 = vpop.f32.mrb[16].mxu0 }
 0x35c   : > { %v1080_v24 = vadd.f32 %v1078_v18, %v1002_v21  ;;  %v1679_v27 = vpop.f32.mrb[17].mxu0 }
 0x35e   : > { %1082 = vst [vmem:[#allocation3] sm:$0x1] %v1080_v24 }
 0x365   : > { %v1252_v5 = vld [vmem:[#allocation3] sm:$0x1] (!%p1483_p12) }
 0x366   : > { %2090 = vrcp.f32 (!%p1483_p12), %v1252_v5 }
 0x370   : > { %v2091_v9 = vpop.eup (!%p1483_p12), %2090 }
 0x371   : > { %v1263_v36 = vrot.slane (!%p1483_p12), %v2091_v9, %v2787_v22 }
 0x37b   : > { %v1152_v31 = vpop.f32.mrb[18].mxu0 }
 0x37c   : > { %v1242_v15 = vadd.f32 %v1240_v42, %v1152_v31  ;;  %v1749_v14 = vpop.f32.mrb[19].mxu0 }
 0x37e   : > { %1244 = vst [vmem:[#allocation4] sm:$0xff] %v1242_v15 }
 0x385   : > { %v1256_v35 = vld [vmem:[#allocation4] sm:$0xff] (!%p1483_p12) }
 0x386   : > { %v1270_v40 = vmul.f32 (!%p1483_p12), %v1263_v36, %v1256_v35 }
 0x388   : > { %1272 = vst [vmem:[%s2695_s25] sm:$0xff] (!%p1483_p12), %v1270_v40 }
 0x39b   : > { %v1072_v25 = vpop.f32.mrb[16].mxu1 }
 0x39c   : > { %v1081_v46 = vadd.f32 %v1079_v23, %v1072_v25  ;;  %v1714_v39 = vpop.f32.mrb[17].mxu1 }
 0x39e   : > { %1083 = vst [vmem:[#allocation3 + $0x1] sm:$0x1] %v1081_v46 }
 0x3a5   : > { %v1253_v6 = vld [vmem:[#allocation3 + $0x1] sm:$0x1] (!%p1483_p12) }
 0x3a6   : > { %2092 = vrcp.f32 (!%p1483_p12), %v1253_v6 }
 0x3b0   : > { %v2093_v16 = vpop.eup (!%p1483_p12), %2092 }
 0x3b1   : > { %v1267_v38 = vrot.slane (!%p1483_p12), %v2093_v16, %v2787_v22 }
 0x3b8   : > { %1251 = sbr.rel (%p1483_p12) target bundleno = 969 (0x3c9), region = 52 }
 0x3bb   : > { %v1222_v33 = vpop.f32.mrb[18].mxu1 }
 0x3bc   : > { %v1243_v19 = vadd.f32 %v1241_v63, %v1222_v33  ;;  %v1784_v34 = vpop.f32.mrb[19].mxu1 }
 0x3be   : > { %1245 = vst [vmem:[#allocation4 + $0x8] sm:$0xff] %v1243_v19 }
 0x3c5   : > { %v1257_v37 = vld [vmem:[#allocation4 + $0x8] sm:$0xff] }
 0x3c6   : > { %v1271_v41 = vmul.f32 %v1267_v38, %v1257_v37 }
 0x3c8   : > { %1273 = vst [vmem:[%s2695_s25 + $0x8] sm:$0xff] %v1271_v41 }
 0x3c9 PF: > { %s3113_s30 = sld [smem:[#allocation21_spill]]  ;;  %s3114_s12 = sld [smem:[#allocation20_spill]] }
 0x3ca   : > { %s3115_s3 = sld [smem:[#allocation28_spill]]  ;;  %s1290_s7 = sshll.u32 %s2695_s25, 4  ;;  %s2950_s7 = int_to_ptr.vmem [resolvable:$true] %s1290_s7 }
 0x3cb   : > { %s3116_s13 = sld [smem:[#allocation32_spill]]  ;;  %s1275_s9 = scalar_lea.sflag [#allocation8], %s2677_s19 }
 0x3cc   : > { %s2186_s18 = scalar_lea.vmem %s2950_s7, 256  ;;  %s2342_s29 = smov [#allocation12]  }
 0x3cd   : > { %p2187_p3 = scmp.ne.s32.totalorder %s2950_s7, %s2186_s18  ;;  %s2190_s11 = sshll.u32 %s2342_s29, 4  ;;  %s2191_s11 = int_to_ptr.vmem [resolvable:$false] %s2190_s11 }
 0x3ce   : > { %s2192_s20 = scalar_lea.vmem %s2191_s11, 512  ;;  %p2193_p5 = scmp.lt.s32.totalorder %s2950_s7, %s2191_s11 }
 0x3cf   : > { %s1490_s28 = sshll.u32 %s3113_s30, 2  ;;  %p2194_p10 = scmp.lt.s32.totalorder %s2192_s20, %s2186_s18 }
 0x3d0   : > { %s1287_s4 = sadd.s32 %s3114_s12, %s1490_s28  ;;  %p3118_p1 = scmp.ne.s32.totalorder %s3115_s3, 0 }
 0x3d1   : > { %s1487_s10 = sshll.u32 %s1287_s4, 7  ;;  %s3117_s6 = smov %s3116_s13 }
 0x3d2   : > { %s2955_s16 = scalar_lea.hbm %s3116_s13, %s1487_s10  ;;  %p2188_p7 = pnand %p2187_p3, %p3118_p1 }
 0x3d3   : > { %p2195_p4 = por %p2194_p10, %p2193_p5 }
 0x3d4   : > { %p2189_p9 = pneg %p2188_p7 }
 0x3d6   : > { %p2196_p2 = pnand %p2195_p4, %p2189_p9 }
 0x3d8   : > { %2199 = shalt.err (!%p2196_p2)
}
 0x3d9   : > { %s2200_s1 = scalar_lea.hbm %s2955_s16, 256  ;;  %s2204_s23 = scalar_lea.hbm %s3117_s6, 2048 }
 0x3da   : > { %p2201_p8 = scmp.ne.s32.totalorder %s2955_s16, %s2200_s1  ;;  %p2205_p11 = scmp.lt.u32.totalorder %s2955_s16, %s3117_s6 }
 0x3db   : > { %p2206_p13 = scmp.lt.u32.totalorder %s2204_s23, %s2200_s1  ;;  %p2208_p3 = scmp.lt.u32.totalorder %s2200_s1, %s2955_s16 }
 0x3dc   : > { %p2202_p6 = pnand %p2201_p8, %p3118_p1 }
 0x3dd   : > { %p2207_p12 = por %p2206_p13, %p2205_p11 }
 0x3de   : > { %p2203_p0 = pneg %p2202_p6 }
 0x3df   : > { %p2209_p7 = por %p2208_p3, %p2207_p12 }
 0x3e1   : > { %p2210_p9 = pnand %p2209_p7, %p2203_p0 }
 0x3e3   : > { %2213 = shalt.err (!%p2210_p9)
}
 0x3e4   : > { %s2343_s28 = smov 128   ;;  %s2344_s4 = smov 256  }
 0x3e5   : > { %s2345_s10 = smov 8  }
 0x3e6   : > { %1888 = dma.vmem_to_hbm [thread:$0]  (%p3118_p1), %s2950_s7, 256, %s2955_s16, %s1275_s9, %s2343_s28, %s2344_s4, %s2345_s10  }
 0x3e7 PF: > { %s3119_s15 = sld [smem:[#allocation17_spill]]  ;;  %p1905_p5 = scmp.ge.s32.totalorder %s2328_s24, 2 }
 0x3e8   : > { %s3120_s8 = sld [smem:[#allocation30_spill]] }
 0x3ed   : > { %s1305_s13 = sand.u32 1, %s3119_s15  }
 0x3ee   : > { %p3121_p10 = scmp.ne.s32.totalorder %s3120_s8, 0  ;;  %s1306_s18 = scalar_lea.sflag [#allocation8], %s1305_s13 }
 0x3f0   : > { %p1901_p4 = pnand %p1905_p5, %p3121_p10 }
 0x3f2   : > { %2275 = dma.done.wait (!%p1901_p4), %s1306_s18, 256  }
 0x3f3   : > { %2277 = vsyncadd (!%p1901_p4), %s1306_s18, 4294967040  ;;  %s22_s24 = sadd.s32 1, %s2328_s24   ;;  %s3123_s12 = sld [smem:[#allocation16_spill]] }
 0x3f4   : > { %p2986_p2 = scmp.ge.s32.totalorder %s22_s24, 18   ;;  %s3124_s15 = sld [smem:[#allocation18_spill]] }
 0x3f5   : > { %s3125_s19 = sld [smem:[#allocation22_spill]]  ;;  %s3126_s20 = sld [smem:[#allocation23_spill]] }
 0x3f6   : > { %s3127_s3 = sld [smem:[#allocation27_spill]]  ;;  %s3128_s23 = sld [smem:[#allocation29_spill]] }
 0x3f7   : > { %s3129_s13 = smov %s2288_s14  ;;  %s3130_s14 = smov %s2597_s27 }
 0x3f8   : > { %s3131_s16 = smov %s2300_s17  ;;  %s3132_s17 = smov %s2592_s22 }
 0x3f9   : > { %s3133_s18 = smov %s2316_s21  ;;  %s3134_s21 = smov %s3137_s26 }
 0x3fa   :  { %21 = sbr.rel (!%p2986_p2) target bundleno = 15 (0xf), region = 109 }
 0x3fc   : > { %s3135_s22 = smov %s3127_s3 }
 0x401   :  { %1311 = vsyncpa [#allocation7], 1 }
 0x402   :  { %1313 = vsyncpa [#allocation7 + $0x1], 1 }
 0x403   :  { %1314 = vsyncpa [#allocation10], 1 }
 0x404   :  { %1316 = vsyncpa [#allocation10 + $0x1], 1 }
 0x405   :  { %1317 = vsyncpa [#allocation8], 1 }
 0x406   :  { %1319 = vsyncpa [#allocation8 + $0x1], 1 }

</bundles_post_ra>
